<compile_context>
chip_gen: v6e
topology: v6e:2x2x1
jax: 0.10.0
libtpu: 0.0.40
codegen_flags: <defaults>
</compile_context>

<pallas_src>
import functools
import math

import jax
import jax.numpy as jnp
from jax.experimental import pallas as pl
from jax.experimental.pallas import tpu as pltpu


def make_pos_embedding(emb_size: int, maxlen: int = 1000) -> jnp.ndarray:
    """Sinusoidal table identical to the PyTorch __init__; shape (maxlen, emb_size)."""
    den = jnp.exp(-jnp.arange(0, emb_size, 2, dtype=jnp.float32)
                  * math.log(10000.0) / emb_size)                      # (ceil(E/2),)
    pos = jnp.arange(0, maxlen, dtype=jnp.float32).reshape(maxlen, 1)  # (maxlen, 1)
    angles = pos * den                                                 # (maxlen, ceil(E/2))
    pe = jnp.zeros((maxlen, emb_size), dtype=jnp.float32)
    pe = pe.at[:, 0::2].set(jnp.sin(angles))
    pe = pe.at[:, 1::2].set(jnp.cos(angles[:, : emb_size // 2]))       # odd-E safe
    return pe


def _pos_add_kernel(x_ref, pos_ref, o_ref, *, batch: int, emb: int,
                    use_batch_loop: bool):
    # x_ref / o_ref: (seq_tile, batch*emb) -- lane-dense slab, sequence on sublanes
    # pos_ref:       (seq_tile, emb)
    if use_batch_loop:
        # Fast path: E % 128 == 0 and small B -> every slice is lane-aligned, every
        # sub-store unmasked; pos is re-read from VMEM (vld slack) instead of hoisted.
        for b in range(batch):
            sl = slice(b * emb, (b + 1) * emb)
            o_ref[:, sl] = x_ref[:, sl] + pos_ref[...]
    else:
        # General path: lane-tile pos once (relayout work is 1/B of the data and sits
        # on otherwise-idle XLU/vld slots), then one full-width unmasked add + store.
        p = pos_ref[...]
        pb = jnp.concatenate([p] * batch, axis=1) if batch > 1 else p
        o_ref[...] = x_ref[...] + pb


def _sublane(itemsize: int) -> int:
    return max(8, 32 // max(itemsize, 1))         # 8 (f32) / 16 (bf16) / 32 (int8)


def _choose_seq_tile(S: int, row_bytes: int, itemsize: int) -> int:
    """Sublane-aligned sequence tile: ~4 MiB x-tile, >=4 grid steps when S allows
    (>=2 steps per TensorCore on v7x dual-TC, pipelined on single-TC chips)."""
    sub = _sublane(itemsize)
    if S <= sub:
        return S                                  # full-dim block: always legal
    target_bytes = 4 * 1024 * 1024                # safe double-buffered on v5e/v6e/v7x
    rows = max(sub, min(S, target_bytes // max(row_bytes, 1)))
    if S >= 4 * sub:
        rows = min(rows, S // 4)                  # >=4 steps -> 2 per core on v7x
    elif S >= 2 * sub:
        rows = min(rows, S // 2)                  # at least 2 steps for overlap
    return max(sub, (rows // sub) * sub)


def positional_encoding(token_embedding: jnp.ndarray,
                        pos_embedding: jnp.ndarray,
                        *,
                        dropout_p: float = 0.0,          # eval mode: identity
                        seq_tile: int | None = None,
                        use_pallas: bool | None = None) -> jnp.ndarray:
    """token_embedding: (S, B, E); pos_embedding: (maxlen, E). Returns (S, B, E)."""
    S, B, E = token_embedding.shape
    dtype = token_embedding.dtype
    itemsize = jnp.dtype(dtype).itemsize
    pos = pos_embedding[:S].astype(dtype)         # (S, E) -- tiny glue slice / cast

    # Small-problem fallback: fixed kernel/call overhead dominates below ~1 MiB.
    total_bytes = S * B * E * itemsize
    if use_pallas is None:
        use_pallas = total_bytes >= (1 << 20)
    if not use_pallas:
        return token_embedding + pos[:, None, :]

    # Free (contiguous, row-major) reshape: lanes become B*E, sublanes carry the sequence.
    x2 = token_embedding.reshape(S, B * E)

    row_bytes = B * E * itemsize
    sub = _sublane(itemsize)
    if seq_tile is None:
        seq_tile = _choose_seq_tile(S, row_bytes, itemsize)
    else:
        seq_tile = max(1, min(int(seq_tile), S))
        if seq_tile != S:                         # validate against (8,128) rule
            seq_tile = max(sub, (seq_tile // sub) * sub)

    grid = (pl.cdiv(S, seq_tile),)                # ragged last block handled by Pallas

    use_batch_loop = (E % 128 == 0) and (B <= 32)
    kernel = functools.partial(_pos_add_kernel, batch=B, emb=E,
                               use_batch_loop=use_batch_loop)

    tile_bytes = seq_tile * B * E * itemsize
    # double-buffered x + out (4x tile) + pos + headroom for the lane-tiled intermediate
    vmem_limit = int(min(64 * 1024 * 1024, max(32 * 1024 * 1024, 6 * tile_bytes)))

    out2 = pl.pallas_call(
        kernel,
        out_shape=jax.ShapeDtypeStruct((S, B * E), dtype),
        grid=grid,
        in_specs=[
            pl.BlockSpec((seq_tile, B * E), lambda i: (i, 0)),
            pl.BlockSpec((seq_tile, E), lambda i: (i, 0)),
        ],
        out_specs=pl.BlockSpec((seq_tile, B * E), lambda i: (i, 0)),
        compiler_params=pltpu.CompilerParams(
            dimension_semantics=("parallel",),
            vmem_limit_bytes=vmem_limit,
        ),
        # Note: with a donated token_embedding one could add input_output_aliases={0: 0}
        # to drop the separate output allocation; left off since the caller may still
        # hold the input (XLA would insert a defensive copy).
    )(x2, pos)

    return out2.reshape(S, B, E)


if __name__ == "__main__":
    key = jax.random.PRNGKey(0)

    # 1) Small shapes consistent with the module (seq=8, batch=2, emb_size=32).
    #    E % 128 != 0 -> exercises the general (lane-tiled pos, full-width store) path.
    S, B, E = 8, 2, 32
    MAXLEN = 1000
    k1, k2 = jax.random.split(key)
    token_embedding = jax.random.normal(k1, (S, B, E), dtype=jnp.float32)
    pos_embedding = make_pos_embedding(E, MAXLEN)
    ref = token_embedding + pos_embedding[:S][:, None, :]
    out = positional_encoding(token_embedding, pos_embedding, use_pallas=True)
    out = jax.block_until_ready(out)
    assert out.shape == (S, B, E)
    assert jnp.allclose(out, ref, atol=1e-6), "mismatch vs reference (general path)"

    # 2) Aligned-E case (E=128) with a multi-step grid -> exercises the batch-loop path.
    S2, B2, E2 = 64, 2, 128
    token2 = jax.random.normal(k2, (S2, B2, E2), dtype=jnp.float32)
    pos2 = make_pos_embedding(E2, 256)
    ref2 = token2 + pos2[:S2][:, None, :]
    out2 = positional_encoding(token2, pos2, use_pallas=True)
    out2 = jax.block_until_ready(out2)
    assert jnp.allclose(out2, ref2, atol=1e-6), "mismatch vs reference (loop path)"

    # 3) Auto mode on the tiny input takes the XLA fallback; just check it matches too.
    out3 = jax.block_until_ready(positional_encoding(token_embedding, pos_embedding))
    assert jnp.allclose(out3, ref, atol=1e-6), "mismatch vs reference (fallback path)"

    print("KERNEL_OK")
</pallas_src>

<mosaic_0001>
module attributes {stable_mosaic.version = 11 : i64} {
  func.func @_pos_add_kernel(%arg0: i32, %arg1: memref<8x64xf32, #tpu.memory_space<vmem>>, %arg2: memref<8x32xf32, #tpu.memory_space<vmem>>, %arg3: memref<8x64xf32, #tpu.memory_space<vmem>>) attributes {dimension_semantics = [#tpu.dimension_semantics<parallel>], iteration_bounds = array<i64: 1>, scalar_prefetch = 0 : i64, scratch_operands = 0 : i64, tpu.core_type = #tpu.core_type<tc>, window_params = [{transform_indices = @transform_0, window_bounds = array<i64: 8, 64>}, {transform_indices = @transform_1, window_bounds = array<i64: 8, 32>}, {transform_indices = @transform_2, window_bounds = array<i64: 8, 64>}]} {
    %c0 = arith.constant 0 : index
    %c0_0 = arith.constant 0 : index
    %0 = vector.load %arg2[%c0, %c0_0] : memref<8x32xf32, #tpu.memory_space<vmem>>, vector<8x32xf32>
    %1 = tpu.concatenate %0, %0 in 1 : vector<8x32xf32>, vector<8x32xf32> -> vector<8x64xf32>
    %c0_1 = arith.constant 0 : index
    %c0_2 = arith.constant 0 : index
    %2 = vector.load %arg1[%c0_1, %c0_2] : memref<8x64xf32, #tpu.memory_space<vmem>>, vector<8x64xf32>
    %3 = arith.addf %2, %1 : vector<8x64xf32>
    %c0_3 = arith.constant 0 : index
    %c0_4 = arith.constant 0 : index
    %4 = vector.load %arg3[%c0_3, %c0_4] : memref<8x64xf32, #tpu.memory_space<vmem>>, vector<8x64xf32>
    tpu.vector_store %arg3[%c0_3, %c0_4], %3 {strides = array<i32>} : memref<8x64xf32, #tpu.memory_space<vmem>>, vector<8x64xf32>,
    return
  }
  func.func @transform_0(%arg0: i32) -> (i32, i32) {
    %c0_i32 = arith.constant 0 : i32
    %c0_i32_0 = arith.constant 0 : i32
    return %arg0, %c0_i32 : i32, i32
  }
  func.func @transform_1(%arg0: i32) -> (i32, i32) {
    %c0_i32 = arith.constant 0 : i32
    %c0_i32_0 = arith.constant 0 : i32
    return %arg0, %c0_i32 : i32, i32
  }
  func.func @transform_2(%arg0: i32) -> (i32, i32) {
    %c0_i32 = arith.constant 0 : i32
    %c0_i32_0 = arith.constant 0 : i32
    return %arg0, %c0_i32 : i32, i32
  }
}

</mosaic_0001>

<bundles_post_ra>
// kernel: tpu_custom_call.1
= control target key start
LH: loop header
LB: loop body
LE: loop exit
PB: predicated region body
PF: predicated region fallthrough
CT: control target
= control target key end

     0   :  { %7 = vsyncpa [#allocation3], 0  ;;  %s161_s0 = inlined_call_operand.hbm [shape: f32[8,64], index: 0, kind: input, shape index: {}]   ;;  %s162_s1 = inlined_call_operand.hbm [shape: f32[8,32], index: 1, kind: input, shape index: {}]   ;;  %s163_s2 = inlined_call_operand.hbm [shape: f32[8,64], index: 2, kind: output, shape index: {}]  }
   0x1   :  { %8 = vsyncpa [#allocation6], 0 }
   0x2   :  { %9 = vsyncpa [#allocation4], 0  ;;  %s133_s9 = smov [#allocation2]   ;;  %s134_s11 = smov [#allocation5]  }
   0x3   :  { %s16_s10 = sshll.u32 %s133_s9, 4  ;;  %s26_s12 = sshll.u32 %s134_s11, 4  ;;  %s17_s10 = int_to_ptr.vmem [resolvable:$true] %s16_s10  ;;  %s27_s12 = int_to_ptr.vmem [resolvable:$true] %s26_s12 }
   0x4   :  { %s75_s13 = scalar_lea.vmem %s17_s10, 128  ;;  %p80_p1 = scmp.lt.s32.totalorder %s17_s10, %s17_s10 }
   0x5   :  { %p76_p0 = scmp.ne.s32.totalorder %s17_s10, %s75_s13  ;;  %p81_p2 = scmp.lt.s32.totalorder %s75_s13, %s75_s13 }
   0x7   :  { %p82_p3 = por %p81_p2, %p80_p1 }
   0x9   :  { %p83_p4 = pnand %p82_p3, %p76_p0 }
   0xb   :  { %86 = shalt.err (!%p83_p4)
}
   0xc   :  { %19 = dma.hbm_to_vmem [thread:$0]  %s161_s0, 128, %s17_s10, [#allocation3]  }
   0xd   :  { %s95_s16 = scalar_lea.vmem %s27_s12, 128  ;;  %p100_p6 = scmp.lt.s32.totalorder %s27_s12, %s27_s12 }
   0xe   :  { %p96_p5 = scmp.ne.s32.totalorder %s27_s12, %s95_s16  ;;  %p101_p7 = scmp.lt.s32.totalorder %s95_s16, %s95_s16 }
  0x10   :  { %p102_p8 = por %p101_p7, %p100_p6 }
  0x12   :  { %p103_p9 = pnand %p102_p8, %p96_p5 }
  0x14   :  { %106 = shalt.err (!%p103_p9)
}
  0x15   :  { %29 = dma.hbm_to_vmem [thread:$0]  %s162_s1, 128, %s27_s12, [#allocation6]  }
  0x16   :  { %127 = dma.done.wait [#allocation3], 128  }
  0x17   :  { %128 = vsyncadd [#allocation3], 4294967168 }
  0x18   :  { %129 = dma.done.wait [#allocation6], 128  }
  0x19   :  { %130 = vsyncadd [#allocation6], 4294967168  ;;  %v36_v0 = vld [vmem:[#allocation5] sm:$0xff]  ;;  %s135_s19 = smov 32   ;;  %vm41_vm0 = vcmask 261120   ;;  %v43_v1 = vld [vmem:[#allocation2] sm:$0xff] }
  0x1a   :  { %38 = vrot.lane.b32.xlu0 %v36_v0, %s135_s19  ;;  %s136_s0 = smov [#allocation7]   ;;  %vm45_vm1 = vcmask 523264  }
  0x1b   :  { %s53_s20 = sshll.u32 %s136_s0, 4  ;;  %s54_s20 = int_to_ptr.vmem [resolvable:$true] %s53_s20 }
  0x1c   :  { %s107_s21 = scalar_lea.vmem %s54_s20, 128  ;;  %p112_p11 = scmp.lt.s32.totalorder %s54_s20, %s54_s20 }
  0x1d   :  { %p108_p10 = scmp.ne.s32.totalorder %s54_s20, %s107_s21  ;;  %p113_p12 = scmp.lt.s32.totalorder %s107_s21, %s107_s21 }
  0x1f   :  { %p114_p13 = por %p113_p12, %p112_p11 }
  0x21   :  { %p115_p0 = pnand %p114_p13, %p108_p10 }
  0x8c   :  { %v39_v2 = vpop.permute.xlu0 %38 }
  0x8d   :  { %v42_v3 = vsel %vm41_vm0, %v36_v0, %v39_v2 }
  0x8e   :  { %v44_v4 = vadd.f32 %v43_v1, %v42_v3 }
  0x90   :  { %46 = vst.msk [vmem:[#allocation7] sm:$0xff] %vm45_vm1, %v44_v4 }
  0x91   :  { %118 = shalt.err (!%p115_p0)
}
  0x92   :  { %56 = dma.vmem_to_hbm [thread:$0]  %s54_s20, 128, %s163_s2, [#allocation4]  }
  0x93   :  { %131 = dma.done.wait [#allocation4], 128  }
  0x94   :  { %132 = vsyncadd [#allocation4], 4294967168 }
  0x95   :  { %60 = vsyncpa [#allocation3], 1 }
  0x96   :  { %61 = vsyncpa [#allocation6], 1 }
  0x97   :  { %62 = vsyncpa [#allocation4], 1 }

</bundles_post_ra>
